<compile_context>
chip_gen: v5e
topology: v5e:2x2
jax: 0.10.0
libtpu: 0.0.40
codegen_flags: <defaults>
</compile_context>

<pallas_src>
import jax
import jax.numpy as jnp
import numpy as np
from jax.experimental import pallas as pl
from jax.experimental.pallas import tpu as pltpu

B, S, H = 2, 8, 32   # batch, seq, hidden_size (small, module-consistent sizes)


def pooler_kernel(h_ref, w_ref, b_ref, out_ref):
    # first-token extraction fused into the kernel: (B, S, H) -> (B, H)
    x = h_ref[...][:, 0, :]
    y = jnp.dot(x, w_ref[...], preferred_element_type=jnp.float32) + b_ref[...]
    out_ref[...] = jnp.tanh(y)


def bert_pooler(hidden, weight, bias):
    return pl.pallas_call(
        pooler_kernel,
        out_shape=jax.ShapeDtypeStruct((B, H), jnp.float32),
        grid=(1,),                                         # single fused step
        in_specs=[
            pl.BlockSpec((B, S, H), lambda i: (0, 0, 0)),  # hidden_states
            pl.BlockSpec((H, H), lambda i: (0, 0)),        # dense weight (in,out)
            pl.BlockSpec((1, H), lambda i: (0, 0)),        # dense bias
        ],
        out_specs=pl.BlockSpec((B, H), lambda i: (0, 0)),
        compiler_params=pltpu.CompilerParams(
            dimension_semantics=("arbitrary",)),
    )(hidden, weight, bias)


# ---- pure-JAX reference (mirrors the PyTorch forward exactly) ----------------
def ref_bert_pooler(hidden, weight, bias):
    return jnp.tanh(hidden[:, 0] @ weight + bias)


if __name__ == "__main__":
    key = jax.random.PRNGKey(0)
    k_h, k_w, k_b = jax.random.split(key, 3)

    hidden = jax.random.normal(k_h, (B, S, H), jnp.float32)
    weight = (0.05 * jax.random.normal(k_w, (H, H))).astype(jnp.float32)
    bias = (0.05 * jax.random.normal(k_b, (1, H))).astype(jnp.float32)

    out = bert_pooler(hidden, weight, bias)
    out = jax.block_until_ready(out)

    ref = ref_bert_pooler(hidden, weight, bias)
    np.testing.assert_allclose(np.asarray(out), np.asarray(ref),
                               rtol=1e-5, atol=1e-5)
    print("KERNEL_OK")
</pallas_src>

<mosaic_0001>
module attributes {stable_mosaic.version = 11 : i64} {
  func.func @pooler_kernel(%arg0: i32, %arg1: memref<2x8x32xf32, #tpu.memory_space<vmem>>, %arg2: memref<32x32xf32, #tpu.memory_space<vmem>>, %arg3: memref<1x32xf32, #tpu.memory_space<vmem>>, %arg4: memref<2x32xf32, #tpu.memory_space<vmem>>) attributes {dimension_semantics = [#tpu.dimension_semantics<arbitrary>], iteration_bounds = array<i64: 1>, scalar_prefetch = 0 : i64, scratch_operands = 0 : i64, tpu.core_type = #tpu.core_type<tc>, window_params = [{pipeline_mode = #tpu.pipeline_mode<synchronous>, transform_indices = @transform_0, window_bounds = array<i64: 2, 8, 32>}, {pipeline_mode = #tpu.pipeline_mode<synchronous>, transform_indices = @transform_1, window_bounds = array<i64: 32, 32>}, {pipeline_mode = #tpu.pipeline_mode<synchronous>, transform_indices = @transform_2, window_bounds = array<i64: 1, 32>}, {pipeline_mode = #tpu.pipeline_mode<synchronous>, transform_indices = @transform_3, window_bounds = array<i64: 2, 32>}]} {
    %c0 = arith.constant 0 : index
    %c0_0 = arith.constant 0 : index
    %c0_1 = arith.constant 0 : index
    %0 = vector.load %arg1[%c0, %c0_0, %c0_1] : memref<2x8x32xf32, #tpu.memory_space<vmem>>, vector<2x8x32xf32>
    %1 = vector.extract_strided_slice %0 {offsets = [0, 0, 0], sizes = [2, 1, 32], strides = [1, 1, 1]} : vector<2x8x32xf32> to vector<2x1x32xf32>
    %2 = vector.shape_cast %1 : vector<2x1x32xf32> to vector<2x32xf32>
    %c0_2 = arith.constant 0 : index
    %c0_3 = arith.constant 0 : index
    %3 = vector.load %arg2[%c0_2, %c0_3] : memref<32x32xf32, #tpu.memory_space<vmem>>, vector<32x32xf32>
    %cst = arith.constant dense<0.000000e+00> : vector<2x32xf32>
    %4 = tpu.matmul %2, %3, %cst {dimension_numbers = #tpu.dot_dimension_numbers<[1], [0], [0], [1], [0, 0, 1, 1], [], []>} : vector<2x32xf32>, vector<32x32xf32>, vector<2x32xf32> -> vector<2x32xf32>
    %c0_4 = arith.constant 0 : index
    %c0_5 = arith.constant 0 : index
    %5 = vector.load %arg3[%c0_4, %c0_5] : memref<1x32xf32, #tpu.memory_space<vmem>>, vector<1x32xf32>
    %6 = vector.broadcast %5 : vector<1x32xf32> to vector<2x32xf32>
    %7 = arith.addf %4, %6 : vector<2x32xf32>
    %8 = math.tanh %7 : vector<2x32xf32>
    %c0_6 = arith.constant 0 : index
    %c0_7 = arith.constant 0 : index
    %9 = vector.load %arg4[%c0_6, %c0_7] : memref<2x32xf32, #tpu.memory_space<vmem>>, vector<2x32xf32>
    tpu.vector_store %arg4[%c0_6, %c0_7], %8 {strides = array<i32>} : memref<2x32xf32, #tpu.memory_space<vmem>>, vector<2x32xf32>,
    return
  }
  func.func @transform_0(%arg0: i32) -> (i32, i32, i32) {
    %c0_i32 = arith.constant 0 : i32
    %c0_i32_0 = arith.constant 0 : i32
    %c0_i32_1 = arith.constant 0 : i32
    %c0_i32_2 = arith.constant 0 : i32
    return %c0_i32, %c0_i32_0, %c0_i32_1 : i32, i32, i32
  }
  func.func @transform_1(%arg0: i32) -> (i32, i32) {
    %c0_i32 = arith.constant 0 : i32
    %c0_i32_0 = arith.constant 0 : i32
    %c0_i32_1 = arith.constant 0 : i32
    return %c0_i32, %c0_i32_0 : i32, i32
  }
  func.func @transform_2(%arg0: i32) -> (i32, i32) {
    %c0_i32 = arith.constant 0 : i32
    %c0_i32_0 = arith.constant 0 : i32
    %c0_i32_1 = arith.constant 0 : i32
    return %c0_i32, %c0_i32_0 : i32, i32
  }
  func.func @transform_3(%arg0: i32) -> (i32, i32) {
    %c0_i32 = arith.constant 0 : i32
    %c0_i32_0 = arith.constant 0 : i32
    %c0_i32_1 = arith.constant 0 : i32
    return %c0_i32, %c0_i32_0 : i32, i32
  }
}

</mosaic_0001>

<bundles_post_ra>
// kernel: tpu_custom_call.1
= control target key start
LH: loop header
LB: loop body
LE: loop exit
PB: predicated region body
PF: predicated region fallthrough
CT: control target
= control target key end

     0   :  { %8 = vsyncpa [#allocation3], 0  ;;  %s230_s0 = inlined_call_operand.hbm [shape: f32[2,8,32], index: 0, kind: input, shape index: {}]   ;;  %s231_s1 = inlined_call_operand.hbm [shape: f32[32,32], index: 1, kind: input, shape index: {}]   ;;  %s232_s2 = inlined_call_operand.vmem [shape: f32[1,32], index: 2, kind: input, shape index: {}]   ;;  %s233_s3 = inlined_call_operand.hbm [shape: f32[2,32], index: 3, kind: output, shape index: {}]  }
   0x1   :  { %9 = vsyncpa [#allocation6], 0 }
   0x2   :  { %10 = vsyncpa [#allocation4], 0  ;;  %s15_s14 = sshll.u32 %s230_s0, 4  ;;  %s193_s15 = smov [#allocation2]   ;;  %s16_s14 = int_to_ptr.hbm [resolvable:$true] %s15_s14 }
   0x3   :  { %s17_s16 = sshll.u32 %s193_s15, 4  ;;  %s28_s19 = sshll.u32 %s231_s1, 4  ;;  %s18_s16 = int_to_ptr.vmem [resolvable:$true] %s17_s16  ;;  %s29_s19 = int_to_ptr.hbm [resolvable:$true] %s28_s19 }
   0x4   :  { %s194_s20 = smov 128   ;;  %s195_s21 = smov 8  }
   0x5   :  { %23 = dma.hbm_to_vmem [thread:$0]  %s16_s14, 256, %s18_s16, [#allocation3], %s194_s20, %s194_s20, %s195_s21  }
   0x6   :  { %s196_s22 = smov [#allocation5]  }
   0x7   :  { %s30_s23 = sshll.u32 %s196_s22, 4  ;;  %s31_s23 = int_to_ptr.vmem [resolvable:$true] %s30_s23 }
   0x8   :  { %36 = dma.hbm_to_vmem [thread:$0]  %s29_s19, 512, %s31_s23, [#allocation6], %s194_s20, %s194_s20, %s195_s21  }
   0x9   :  { %187 = dma.done.wait [#allocation3], 256  }
   0xa   :  { %188 = vsyncadd [#allocation3], 4294967040 }
   0xb   :  { %189 = dma.done.wait [#allocation6], 512  }
   0xc   :  { %190 = vsyncadd [#allocation6], 4294966784  ;;  %v52_v0 = vld [vmem:[#allocation5 + $0x18] sm:$0xff]  ;;  %v51_v1 = vld [vmem:[#allocation5 + $0x10] sm:$0xff]  ;;  %vm60_vm0 = vcmask 1041409   ;;  %vm62_vm1 = vcmask 261120  }
   0xd   :  { %77 = vmatpush.msra.mxu0 %v52_v0  ;;  %v48_v2 = vld [vmem:[#allocation2 + $0x8] sm:$0xff]  ;;  %v50_v3 = vld [vmem:[#allocation5 + $0x8] sm:$0xff]  ;;  %v47_v4 = vld [vmem:[#allocation2] sm:$0xff]  ;;  %s197_s24 = smov [#allocation7]   ;;  %s95_s28 = sshll.u32 %s233_s3, 4  ;;  %vm86_vm2 = vcmask 254976   ;;  %s96_s28 = int_to_ptr.hbm [resolvable:$true] %s95_s28 }
   0xe   :  { %v59_v5 = vrot.slane %v48_v2, 7  ;;  %v49_v6 = vld [vmem:[#allocation5] sm:$0xff]  ;;  %v112_v8 = vld [vmem:[%s232_s2] ss:$0 sm:$0xff]  ;;  %s93_s25 = sshll.u32 %s197_s24, 4  ;;  %s94_s25 = int_to_ptr.vmem [resolvable:$true] %s93_s25 }
   0xf   :  { %78 = vmatpush.msra.mxu0 %v51_v1 }
  0x10   :  { %v61_v7 = vsel %vm60_vm0, %v59_v5, %v47_v4 }
  0x11   :  { %79 = vmatpush.msra.mxu0 %v50_v3 }
  0x13   :  { %80 = vmatpush.msra.mxu0 %v49_v6 }
  0x14   :  { %106 = vmatmul.msk.f32.vlgmr.msra.gmra.mxu0 %vm62_vm1, %v61_v7 }
  0x91   :  { %v82_v9 = vpop.f32.mrf.mxu0 }
  0x92   :  { %v83_v10 = vadd.f32 %v112_v8, %v82_v9 }
  0x94   :  { %113 = vtanh.f32 %v83_v10 }
  0x9a   :  { %v114_v11 = vpop.eup %113 }
  0x9b   :  { %87 = vst.msk [vmem:[#allocation7] sm:$0x3] %vm86_vm2, %v114_v11 }
  0x9c   :  { %98 = dma.vmem_to_hbm [thread:$0]  %s94_s25, 32, %s96_s28, [#allocation4]  }
  0x9d   :  { %191 = dma.done.wait [#allocation4], 32  }
  0x9e   :  { %192 = vsyncadd [#allocation4], 4294967264 }
  0x9f   :  { %103 = vsyncpa [#allocation3], 1 }
  0xa0   :  { %104 = vsyncpa [#allocation6], 1 }
  0xa1   :  { %105 = vsyncpa [#allocation4], 1 }

</bundles_post_ra>
